<compile_context>
chip_gen: v5e
topology: v5e:2x2
jax: 0.10.0
libtpu: 0.0.40
codegen_flags: <defaults>
</compile_context>

<pallas_src>
import math

import jax
import jax.numpy as jnp
import numpy as np
from jax.experimental import pallas as pl
from jax.experimental.pallas import tpu as pltpu

WIN = 11
SIGMA = 1.5
K1 = 0.01
K2 = 0.03


def _gaussian_1d(win_size=WIN, sigma=SIGMA):
    coords = [i - win_size // 2 for i in range(win_size)]
    g = [math.exp(-(c * c) / (2.0 * sigma * sigma)) for c in coords]
    s = sum(g)
    return [v / s for v in g]


_GAUSS = _gaussian_1d()


def _largest_divisor_leq(n, cap):
    cap = max(1, min(int(cap), int(n)))
    for d in range(cap, 0, -1):
        if n % d == 0:
            return d
    return 1


def _make_kernel(H, W, P, G, data_range, blockdiag):
    Ho, Wo = H - WIN + 1, W - WIN + 1
    C1 = (K1 * data_range) ** 2
    C2 = (K2 * data_range) ** 2
    n_groups = P // G
    GW, GWo = G * W, G * Wo

    def kernel(gr_ref, gc_ref, p_ref, t_ref, out_ref, acc_ref):
        i = pl.program_id(1)

        @pl.when(i == 0)
        def _():
            acc_ref[...] = jnp.zeros_like(acc_ref)

        gr = gr_ref[...]   # (Ho, H)   banded row filter
        gc = gc_ref[...]   # (5GW, 5GWo) block-diag column filter, or (W, Wo)

        def ssim_map(mu1, mu2, ex2, ey2, exy):
            mu1_sq = mu1 * mu1
            mu2_sq = mu2 * mu2
            mu1_mu2 = mu1 * mu2
            s1 = ex2 - mu1_sq
            s2 = ey2 - mu2_sq
            s12 = exy - mu1_mu2
            num = (2.0 * mu1_mu2 + C1) * (2.0 * s12 + C2)
            den = (mu1_sq + mu2_sq + C1) * (s1 + s2 + C2)
            return num * pl.reciprocal(den)   # exact; single fused divide

        # Pack planes along lanes, grouped by quantity per group of G planes:
        #   [ x_p0..x_pG-1 | y_p0.. | x^2.. | y^2.. | x*y.. ]  per group.
        # Products are computed on wide (H, G*W) slabs (better VPU shapes).
        pieces = []
        for g in range(n_groups):
            xs = [p_ref[g * G + j].astype(jnp.float32) for j in range(G)]
            ys = [t_ref[g * G + j].astype(jnp.float32) for j in range(G)]
            xc = xs[0] if G == 1 else jnp.concatenate(xs, axis=1)   # (H, G*W)
            yc = ys[0] if G == 1 else jnp.concatenate(ys, axis=1)
            pieces += [xc, yc, xc * xc, yc * yc, xc * yc]
        stacked = jnp.concatenate(pieces, axis=1) if len(pieces) > 1 else pieces[0]

        # Row pass of the separable Gaussian: one wide MXU matmul covering all
        # P planes x 5 quantities.
        rf = jnp.dot(gr, stacked, preferred_element_type=jnp.float32)  # (Ho, 5*P*W)

        total = jnp.zeros(acc_ref.shape, jnp.float32)
        for g in range(n_groups):
            base = g * 5 * GW
            sub = rf if n_groups == 1 else rf[:, base:base + 5 * GW]
            if blockdiag:
                # Column pass: all 5 quantities x G planes in one matmul.
                f = jnp.dot(sub, gc, preferred_element_type=jnp.float32)  # (Ho, 5*G*Wo)
                total = total + ssim_map(
                    f[:, 0:GWo], f[:, GWo:2 * GWo], f[:, 2 * GWo:3 * GWo],
                    f[:, 3 * GWo:4 * GWo], f[:, 4 * GWo:5 * GWo])
            else:
                # Fallback for very wide images: per-plane column matmuls.
                for j in range(G):
                    def col(q, _j=j):
                        off = q * GW + _j * W
                        return jnp.dot(sub[:, off:off + W], gc,
                                       preferred_element_type=jnp.float32)
                    total = total + ssim_map(col(0), col(1), col(2), col(3), col(4))
        acc_ref[...] += total

        @pl.when(i == pl.num_programs(1) - 1)
        def _():
            out_ref[0] = jnp.sum(acc_ref[...], axis=(0, 1), keepdims=True)

    return kernel


def ssim_loss(pred, target, data_range=1.0, size_average=True):
    """1 - SSIM(pred, target). pred/target: (N, C, H, W) arrays."""
    # TODO(synk): size_average=False (per-image SSIM vector) not implemented;
    # only the default size_average=True scalar-loss path is reproduced.
    N, C, H, W = pred.shape
    assert H >= WIN and W >= WIN, "spatial dims must be >= 11 for SSIM window"
    planes = N * C
    Ho, Wo = H - WIN + 1, W - WIN + 1

    # Banded Gaussian matrices so the valid separable conv runs on the MXU.
    g = np.asarray(_GAUSS, np.float32)
    Gr = np.zeros((Ho, H), np.float32)
    for r in range(Ho):
        Gr[r, r:r + WIN] = g
    Gc = np.zeros((W, Wo), np.float32)
    for c in range(Wo):
        Gc[c:c + WIN, c] = g

    # Plane grouping: outer "parallel" axis (megacore split on v7x), inner
    # "arbitrary" accumulation axis, P planes per grid step.
    n_outer = 2 if planes % 2 == 0 else 1
    per_outer = planes // n_outer
    itemsize = pred.dtype.itemsize
    p_cap = max(1, (4 << 20) // max(1, 4 * H * W * itemsize))
    p_cap = min(p_cap, 16, per_outer)
    P = _largest_divisor_leq(per_outer, p_cap)
    n_inner = per_outer // P

    # Column filter: block-diagonal kron(I_{5G}, Gc) finishing 5 quantities x
    # G planes per matmul.  Pick the largest G | P under a VMEM budget; fall
    # back to the plain (W, Wo) filter for very wide images.
    KRON_BUDGET = 6 << 20
    blockdiag = (5 * W) * (5 * Wo) * 4 <= KRON_BUDGET
    if blockdiag:
        G = 1
        for d in range(P, 0, -1):
            if P % d == 0 and (5 * d * W) * (5 * d * Wo) * 4 <= KRON_BUDGET:
                G = d
                break
        Gc_in = np.kron(np.eye(5 * G, dtype=np.float32), Gc)
        gc_shape = (5 * G * W, 5 * G * Wo)
        acc_shape = (Ho, G * Wo)
    else:
        G = P
        Gc_in = Gc
        gc_shape = (W, Wo)
        acc_shape = (Ho, Wo)

    kernel = _make_kernel(H, W, P, G, float(data_range), blockdiag)

    # Keep the input dtype (no wrapper upcast); the kernel casts to f32.
    p = pred.reshape(planes, H, W)
    t = target.reshape(planes, H, W)

    est_bytes = (4 * P * H * W * itemsize        # double-buffered input blocks
                 + 12 * P * H * W * 4            # stacked + rf + temporaries
                 + Gr.nbytes + 2 * Gc_in.nbytes
                 + 4 * acc_shape[0] * acc_shape[1] * 4)
    vmem_limit = int(min(64 << 20, max(16 << 20, 2 * est_bytes)))

    partials = pl.pallas_call(
        kernel,
        out_shape=jax.ShapeDtypeStruct((n_outer, 1, 1), jnp.float32),
        grid_spec=pltpu.PrefetchScalarGridSpec(
            num_scalar_prefetch=0,
            grid=(n_outer, n_inner),
            in_specs=[
                pl.BlockSpec((Ho, H), lambda o, i: (0, 0)),
                pl.BlockSpec(gc_shape, lambda o, i: (0, 0)),
                pl.BlockSpec((P, H, W), lambda o, i: (o * n_inner + i, 0, 0)),
                pl.BlockSpec((P, H, W), lambda o, i: (o * n_inner + i, 0, 0)),
            ],
            out_specs=pl.BlockSpec((1, 1, 1), lambda o, i: (o, 0, 0)),
            scratch_shapes=[pltpu.VMEM(acc_shape, jnp.float32)],
        ),
        compiler_params=pltpu.CompilerParams(
            dimension_semantics=("parallel", "arbitrary"),
            vmem_limit_bytes=vmem_limit),
    )(jnp.asarray(Gr), jnp.asarray(Gc_in), p, t)

    ssim_mean = jnp.sum(partials) / float(planes * Ho * Wo)
    return 1.0 - ssim_mean


# ---- pure-JAX reference (exact f32 slice-tap filter; no MXU) ---------------
def _ssim_loss_ref(pred, target, data_range=1.0):
    N, C, H, W = pred.shape
    Ho, Wo = H - WIN + 1, W - WIN + 1
    C1 = (K1 * data_range) ** 2
    C2 = (K2 * data_range) ** 2

    def filt(img):
        r = 0.0
        for a in range(WIN):
            r = r + _GAUSS[a] * img[..., a:a + Ho, :]
        out = 0.0
        for b in range(WIN):
            out = out + _GAUSS[b] * r[..., :, b:b + Wo]
        return out

    x = pred.astype(jnp.float32)
    y = target.astype(jnp.float32)
    mu1, mu2 = filt(x), filt(y)
    s1 = filt(x * x) - mu1 * mu1
    s2 = filt(y * y) - mu2 * mu2
    s12 = filt(x * y) - mu1 * mu2
    cs = (2 * s12 + C2) / (s1 + s2 + C2)
    ssim_map = ((2 * mu1 * mu2 + C1) / (mu1 * mu1 + mu2 * mu2 + C1)) * cs
    return 1.0 - ssim_map.mean()


if __name__ == "__main__":
    key = jax.random.PRNGKey(0)
    k1, k2 = jax.random.split(key)
    N, C, H, W = 2, 4, 16, 16
    pred = jax.random.uniform(k1, (N, C, H, W), dtype=jnp.float32)
    target = jax.random.uniform(k2, (N, C, H, W), dtype=jnp.float32)

    loss = jax.block_until_ready(ssim_loss(pred, target, data_range=1.0))
    ref = jax.block_until_ready(_ssim_loss_ref(pred, target, data_range=1.0))

    assert jnp.allclose(loss, ref, atol=1e-4, rtol=1e-4), (loss, ref)
    print("KERNEL_OK")
</pallas_src>

<mosaic_0001>
module attributes {stable_mosaic.version = 11 : i64} {
  func.func @kernel(%arg0: i32, %arg1: i32, %arg2: memref<6x16xf32, #tpu.memory_space<vmem>>, %arg3: memref<320x120xf32, #tpu.memory_space<vmem>>, %arg4: memref<4x16x16xf32, #tpu.memory_space<vmem>>, %arg5: memref<4x16x16xf32, #tpu.memory_space<vmem>>, %arg6: memref<1x1x1xf32, #tpu.memory_space<vmem>>, %arg7: memref<6x24xf32, #tpu.memory_space<vmem>>) attributes {dimension_semantics = [#tpu.dimension_semantics<parallel>, #tpu.dimension_semantics<arbitrary>], iteration_bounds = array<i64: 2, 1>, scalar_prefetch = 0 : i64, scratch_operands = 1 : i64, tpu.core_type = #tpu.core_type<tc>, window_params = [{pipeline_mode = #tpu.pipeline_mode<synchronous>, transform_indices = @transform_0, window_bounds = array<i64: 6, 16>}, {pipeline_mode = #tpu.pipeline_mode<synchronous>, transform_indices = @transform_1, window_bounds = array<i64: 320, 120>}, {transform_indices = @transform_2, window_bounds = array<i64: 4, 16, 16>}, {transform_indices = @transform_3, window_bounds = array<i64: 4, 16, 16>}, {transform_indices = @transform_4, window_bounds = array<i64: 1, 1, 1>}]} {
    %c0_i32 = arith.constant 0 : i32
    %0 = arith.cmpi eq, %arg1, %c0_i32 : i32
    %1 = arith.extui %0 : i1 to i32
    %c0_i32_0 = arith.constant 0 : i32
    %2 = arith.cmpi ne, %1, %c0_i32_0 : i32
    scf.if %2 {
      %cst_39 = arith.constant 0.000000e+00 : f32
      %66 = vector.broadcast %cst_39 : f32 to vector<6x24xf32>
      %c0_40 = arith.constant 0 : index
      %c0_41 = arith.constant 0 : index
      %67 = vector.load %arg7[%c0_40, %c0_41] : memref<6x24xf32, #tpu.memory_space<vmem>>, vector<6x24xf32>
      tpu.vector_store %arg7[%c0_40, %c0_41], %66 {strides = array<i32>} : memref<6x24xf32, #tpu.memory_space<vmem>>, vector<6x24xf32>,
    } else {
    }
    %c0 = arith.constant 0 : index
    %c0_1 = arith.constant 0 : index
    %3 = vector.load %arg2[%c0, %c0_1] : memref<6x16xf32, #tpu.memory_space<vmem>>, vector<6x16xf32>
    %c0_2 = arith.constant 0 : index
    %c0_3 = arith.constant 0 : index
    %4 = vector.load %arg3[%c0_2, %c0_3] : memref<320x120xf32, #tpu.memory_space<vmem>>, vector<320x120xf32>
    %c0_4 = arith.constant 0 : index
    %c0_5 = arith.constant 0 : index
    %c0_6 = arith.constant 0 : index
    %5 = vector.load %arg4[%c0_4, %c0_5, %c0_6] : memref<4x16x16xf32, #tpu.memory_space<vmem>>, vector<1x16x16xf32>
    %6 = vector.shape_cast %5 : vector<1x16x16xf32> to vector<16x16xf32>
    %c1 = arith.constant 1 : index
    %c0_7 = arith.constant 0 : index
    %c0_8 = arith.constant 0 : index
    %7 = vector.load %arg4[%c1, %c0_7, %c0_8] : memref<4x16x16xf32, #tpu.memory_space<vmem>>, vector<1x16x16xf32>
    %8 = vector.shape_cast %7 : vector<1x16x16xf32> to vector<16x16xf32>
    %c2 = arith.constant 2 : index
    %c0_9 = arith.constant 0 : index
    %c0_10 = arith.constant 0 : index
    %9 = vector.load %arg4[%c2, %c0_9, %c0_10] : memref<4x16x16xf32, #tpu.memory_space<vmem>>, vector<1x16x16xf32>
    %10 = vector.shape_cast %9 : vector<1x16x16xf32> to vector<16x16xf32>
    %c3 = arith.constant 3 : index
    %c0_11 = arith.constant 0 : index
    %c0_12 = arith.constant 0 : index
    %11 = vector.load %arg4[%c3, %c0_11, %c0_12] : memref<4x16x16xf32, #tpu.memory_space<vmem>>, vector<1x16x16xf32>
    %12 = vector.shape_cast %11 : vector<1x16x16xf32> to vector<16x16xf32>
    %c0_13 = arith.constant 0 : index
    %c0_14 = arith.constant 0 : index
    %c0_15 = arith.constant 0 : index
    %13 = vector.load %arg5[%c0_13, %c0_14, %c0_15] : memref<4x16x16xf32, #tpu.memory_space<vmem>>, vector<1x16x16xf32>
    %14 = vector.shape_cast %13 : vector<1x16x16xf32> to vector<16x16xf32>
    %c1_16 = arith.constant 1 : index
    %c0_17 = arith.constant 0 : index
    %c0_18 = arith.constant 0 : index
    %15 = vector.load %arg5[%c1_16, %c0_17, %c0_18] : memref<4x16x16xf32, #tpu.memory_space<vmem>>, vector<1x16x16xf32>
    %16 = vector.shape_cast %15 : vector<1x16x16xf32> to vector<16x16xf32>
    %c2_19 = arith.constant 2 : index
    %c0_20 = arith.constant 0 : index
    %c0_21 = arith.constant 0 : index
    %17 = vector.load %arg5[%c2_19, %c0_20, %c0_21] : memref<4x16x16xf32, #tpu.memory_space<vmem>>, vector<1x16x16xf32>
    %18 = vector.shape_cast %17 : vector<1x16x16xf32> to vector<16x16xf32>
    %c3_22 = arith.constant 3 : index
    %c0_23 = arith.constant 0 : index
    %c0_24 = arith.constant 0 : index
    %19 = vector.load %arg5[%c3_22, %c0_23, %c0_24] : memref<4x16x16xf32, #tpu.memory_space<vmem>>, vector<1x16x16xf32>
    %20 = vector.shape_cast %19 : vector<1x16x16xf32> to vector<16x16xf32>
    %21 = tpu.concatenate %6, %8, %10, %12 in 1 : vector<16x16xf32>, vector<16x16xf32>, vector<16x16xf32>, vector<16x16xf32> -> vector<16x64xf32>
    %22 = tpu.concatenate %14, %16, %18, %20 in 1 : vector<16x16xf32>, vector<16x16xf32>, vector<16x16xf32>, vector<16x16xf32> -> vector<16x64xf32>
    %23 = arith.mulf %21, %21 : vector<16x64xf32>
    %24 = arith.mulf %22, %22 : vector<16x64xf32>
    %25 = arith.mulf %21, %22 : vector<16x64xf32>
    %26 = tpu.concatenate %21, %22, %23, %24, %25 in 1 : vector<16x64xf32>, vector<16x64xf32>, vector<16x64xf32>, vector<16x64xf32>, vector<16x64xf32> -> vector<16x320xf32>
    %cst = arith.constant dense<0.000000e+00> : vector<6x320xf32>
    %27 = tpu.matmul %3, %26, %cst {dimension_numbers = #tpu.dot_dimension_numbers<[1], [0], [0], [1], [0, 0, 1, 1], [], []>} : vector<6x16xf32>, vector<16x320xf32>, vector<6x320xf32> -> vector<6x320xf32>
    %cst_25 = arith.constant 0.000000e+00 : f32
    %28 = vector.broadcast %cst_25 : f32 to vector<6x24xf32>
    %cst_26 = arith.constant dense<0.000000e+00> : vector<6x120xf32>
    %29 = tpu.matmul %27, %4, %cst_26 {dimension_numbers = #tpu.dot_dimension_numbers<[1], [0], [0], [1], [0, 0, 1, 1], [], []>} : vector<6x320xf32>, vector<320x120xf32>, vector<6x120xf32> -> vector<6x120xf32>
    %30 = vector.extract_strided_slice %29 {offsets = [0, 0], sizes = [6, 24], strides = [1, 1]} : vector<6x120xf32> to vector<6x24xf32>
    %31 = vector.extract_strided_slice %29 {offsets = [0, 24], sizes = [6, 24], strides = [1, 1]} : vector<6x120xf32> to vector<6x24xf32>
    %32 = vector.extract_strided_slice %29 {offsets = [0, 48], sizes = [6, 24], strides = [1, 1]} : vector<6x120xf32> to vector<6x24xf32>
    %33 = vector.extract_strided_slice %29 {offsets = [0, 72], sizes = [6, 24], strides = [1, 1]} : vector<6x120xf32> to vector<6x24xf32>
    %34 = vector.extract_strided_slice %29 {offsets = [0, 96], sizes = [6, 24], strides = [1, 1]} : vector<6x120xf32> to vector<6x24xf32>
    %35 = arith.mulf %30, %30 : vector<6x24xf32>
    %36 = arith.mulf %31, %31 : vector<6x24xf32>
    %37 = arith.mulf %30, %31 : vector<6x24xf32>
    %38 = arith.subf %32, %35 : vector<6x24xf32>
    %39 = arith.subf %33, %36 : vector<6x24xf32>
    %40 = arith.subf %34, %37 : vector<6x24xf32>
    %cst_27 = arith.constant 2.000000e+00 : f32
    %41 = vector.broadcast %cst_27 : f32 to vector<6x24xf32>
    %42 = arith.mulf %41, %37 : vector<6x24xf32>
    %cst_28 = arith.constant 9.99999974E-5 : f32
    %43 = vector.broadcast %cst_28 : f32 to vector<6x24xf32>
    %44 = arith.addf %42, %43 : vector<6x24xf32>
    %cst_29 = arith.constant 2.000000e+00 : f32
    %45 = vector.broadcast %cst_29 : f32 to vector<6x24xf32>
    %46 = arith.mulf %45, %40 : vector<6x24xf32>
    %cst_30 = arith.constant 8.99999984E-4 : f32
    %47 = vector.broadcast %cst_30 : f32 to vector<6x24xf32>
    %48 = arith.addf %46, %47 : vector<6x24xf32>
    %49 = arith.mulf %44, %48 : vector<6x24xf32>
    %50 = arith.addf %35, %36 : vector<6x24xf32>
    %cst_31 = arith.constant 9.99999974E-5 : f32
    %51 = vector.broadcast %cst_31 : f32 to vector<6x24xf32>
    %52 = arith.addf %50, %51 : vector<6x24xf32>
    %53 = arith.addf %38, %39 : vector<6x24xf32>
    %cst_32 = arith.constant 8.99999984E-4 : f32
    %54 = vector.broadcast %cst_32 : f32 to vector<6x24xf32>
    %55 = arith.addf %53, %54 : vector<6x24xf32>
    %56 = arith.mulf %52, %55 : vector<6x24xf32>
    %57 = tpu.reciprocal %56 : vector<6x24xf32> -> vector<6x24xf32>
    %58 = arith.mulf %49, %57 : vector<6x24xf32>
    %59 = arith.addf %28, %58 : vector<6x24xf32>
    %c0_33 = arith.constant 0 : index
    %c0_34 = arith.constant 0 : index
    %60 = vector.load %arg7[%c0_33, %c0_34] : memref<6x24xf32, #tpu.memory_space<vmem>>, vector<6x24xf32>
    %61 = arith.addf %60, %59 : vector<6x24xf32>
    %c0_35 = arith.constant 0 : index
    %c0_36 = arith.constant 0 : index
    %62 = vector.load %arg7[%c0_35, %c0_36] : memref<6x24xf32, #tpu.memory_space<vmem>>, vector<6x24xf32>
    tpu.vector_store %arg7[%c0_35, %c0_36], %61 {strides = array<i32>} : memref<6x24xf32, #tpu.memory_space<vmem>>, vector<6x24xf32>,
    %c0_i32_37 = arith.constant 0 : i32
    %63 = arith.cmpi eq, %arg1, %c0_i32_37 : i32
    %64 = arith.extui %63 : i1 to i32
    %c0_i32_38 = arith.constant 0 : i32
    %65 = arith.cmpi ne, %64, %c0_i32_38 : i32
    scf.if %65 {
      %c0_39 = arith.constant 0 : index
      %c0_40 = arith.constant 0 : index
      %66 = vector.load %arg7[%c0_39, %c0_40] : memref<6x24xf32, #tpu.memory_space<vmem>>, vector<6x24xf32>
      %67 = vector.shape_cast %66 : vector<6x24xf32> to vector<1x6x24xf32>
      %cst_41 = arith.constant dense<0.000000e+00> : vector<1xf32>
      %68 = vector.multi_reduction <add>, %67, %cst_41 [1, 2] : vector<1x6x24xf32> to vector<1xf32>
      %69 = vector.shape_cast %68 : vector<1xf32> to vector<1x1x1xf32>
      %70 = vector.extract %69[0, 0, 0] : f32 from vector<1x1x1xf32>
      %71 = vector.broadcast %70 : f32 to vector<1x1xf32>
      %c0_42 = arith.constant 0 : index
      %c0_43 = arith.constant 0 : index
      %c0_44 = arith.constant 0 : index
      %72 = vector.load %arg6[%c0_42, %c0_43, %c0_44] : memref<1x1x1xf32, #tpu.memory_space<vmem>>, vector<1x1x1xf32>
      %73 = vector.shape_cast %72 : vector<1x1x1xf32> to vector<1x1xf32>
      %74 = vector.shape_cast %71 : vector<1x1xf32> to vector<1x1x1xf32>
      tpu.vector_store %arg6[%c0_42, %c0_43, %c0_44], %74 {strides = array<i32>} : memref<1x1x1xf32, #tpu.memory_space<vmem>>, vector<1x1x1xf32>,
    } else {
    }
    return
  }
  func.func @transform_0(%arg0: i32, %arg1: i32) -> (i32, i32) {
    %c0_i32 = arith.constant 0 : i32
    %c0_i32_0 = arith.constant 0 : i32
    %c0_i32_1 = arith.constant 0 : i32
    return %c0_i32, %c0_i32_0 : i32, i32
  }
  func.func @transform_1(%arg0: i32, %arg1: i32) -> (i32, i32) {
    %c0_i32 = arith.constant 0 : i32
    %c0_i32_0 = arith.constant 0 : i32
    %c0_i32_1 = arith.constant 0 : i32
    return %c0_i32, %c0_i32_0 : i32, i32
  }
  func.func @transform_2(%arg0: i32, %arg1: i32) -> (i32, i32, i32) {
    %c1_i32 = arith.constant 1 : i32
    %0 = arith.muli %arg0, %c1_i32 : i32
    %1 = arith.addi %0, %arg1 : i32
    %c0_i32 = arith.constant 0 : i32
    %c0_i32_0 = arith.constant 0 : i32
    %c0_i32_1 = arith.constant 0 : i32
    return %1, %c0_i32, %c0_i32_0 : i32, i32, i32
  }
  func.func @transform_3(%arg0: i32, %arg1: i32) -> (i32, i32, i32) {
    %c1_i32 = arith.constant 1 : i32
    %0 = arith.muli %arg0, %c1_i32 : i32
    %1 = arith.addi %0, %arg1 : i32
    %c0_i32 = arith.constant 0 : i32
    %c0_i32_0 = arith.constant 0 : i32
    %c0_i32_1 = arith.constant 0 : i32
    return %1, %c0_i32, %c0_i32_0 : i32, i32, i32
  }
  func.func @transform_4(%arg0: i32, %arg1: i32) -> (i32, i32, i32) {
    %c0_i32 = arith.constant 0 : i32
    %c0_i32_0 = arith.constant 0 : i32
    %c0_i32_1 = arith.constant 0 : i32
    return %arg0, %c0_i32, %c0_i32_0 : i32, i32, i32
  }
}

</mosaic_0001>

<bundles_post_ra>
// kernel: tpu_custom_call.1
= control target key start
LH: loop header
LB: loop body
LE: loop exit
PB: predicated region body
PF: predicated region fallthrough
CT: control target
= control target key end

     0   :  { %s1351_s0 = inlined_call_operand.hbm [shape: f32[6,16], index: 0, kind: input, shape index: {}]   ;;  %s1352_s1 = inlined_call_operand.hbm [shape: f32[320,120], index: 1, kind: input, shape index: {}]   ;;  %s1353_s2 = inlined_call_operand.hbm [shape: f32[8,16,16], index: 2, kind: input, shape index: {}]   ;;  %s1354_s3 = inlined_call_operand.hbm [shape: f32[8,16,16], index: 3, kind: input, shape index: {}]   ;;  %s1355_s4 = inlined_call_operand.vmem [shape: f32[2,1,1], index: 4, kind: output, shape index: {}]  }
   0x1   :  { %1359 = sst [smem:[#allocation14_spill]] %s1351_s0 }
   0x2   :  { %1360 = sst [smem:[#allocation15_spill]] %s1353_s2 }
   0x3   :  { %9 = vsyncpa [#allocation4], 0 }
   0x4   :  { %10 = vsyncpa [#allocation6], 0  ;;  %s1142_s15 = smov 0   ;;  %s1144_s16 = smov 0  }
   0x5   :  { %s1146_s17 = smov 0   ;;  %s1148_s18 = smov 0  }
   0x6   :  { %s1150_s19 = smov 0   ;;  %s1152_s20 = smov 0  }
   0x7 LB: > { %1361 = sst [smem:[#allocation12_spill]] %s1099_s19  ;;  %s1356_s21 = sadd.s32 4294967295, %s1103_s20   ;;  %s1103_s20 = sphi %s1152_s20, %s16_s20   ;;  %s1099_s19 = sphi %s1150_s19, %s1373_s19   ;;  %s1095_s18 = sphi %s1148_s18, %s1372_s18   ;;  %s1091_s17 = sphi %s1146_s17, %s1376_s17   ;;  %s1087_s16 = sphi %s1144_s16, %s1375_s16   ;;  %s1083_s15 = sphi %s1142_s15, %s1374_s15  }
   0x8   : > { %s79_s22 = sadd.s32 1, %s1091_s17  ;;  %p86_p0 = scmp.ne.s32.totalorder %s1091_s17, %s1087_s16 }
   0x9   : > { %p87_p1 = scmp.eq.s32.totalorder %s1103_s20, 0  ;;  %p92_p2 = scmp.ne.s32.totalorder %s1087_s16, %s1083_s15 }
   0xa   : > { %p1178_p3 = scmp.eq.s32.totalorder %s1356_s21, 0  ;;  %p781_p5 = scmp.ge.s32.totalorder %s1103_s20, 1 }
   0xb   : > { %p1182_p4 = por %p87_p1, %p86_p0  ;;  %p157_p7 = scmp.lt.s32.totalorder %s1103_s20, 3 }
   0xc   : > { %p1189_p6 = por %p1178_p3, %p92_p2  ;;  %s1365_s0 = sld [smem:[#allocation14_spill]] }
   0xd   : > { %p1197_p8 = pnand %p781_p5, %p157_p7  ;;  %s1105_s30 = smov [#allocation3]  }
   0xe   : > { %s171_s5 = sshll.u32 %s1105_s30, 4  ;;  %p850_p10 = scmp.lt.s32.totalorder %s1103_s20, 2  ;;  %s172_s5 = int_to_ptr.vmem [resolvable:$true] %s171_s5 }
   0xf   : > { %p834_p9 = pneg %p1197_p8  ;;  %s28_s8 = sadd.s32 1, %s1099_s19 }
  0x10   : > { %p1212_p12 = pnand %p850_p10, %p1182_p4  ;;  %p30_p13 = scmp.ge.s32.totalorder %s28_s8, 2 }
  0x11   : > { %p1206_p11 = pnand %p834_p9, %p1178_p3  ;;  %s196_s9 = sand.u32 1, %s1103_s20  }
  0x12   : > { %s169_s28 = sshll.u32 %s1365_s0, 4  ;;  %s1378_s8 = smov (%p30_p13, %s28_s8), 0  ;;  %s170_s28 = int_to_ptr.hbm [resolvable:$true] %s169_s28 }
  0x13   : > { %837 = dma.hbm_to_vmem [thread:$0]  (!%p1206_p11), %s170_s28, 128, %s172_s5, [#allocation4]  }
  0x14   : > { %1369 = sst [smem:[#allocation13_spill]] %s1378_s8  ;;  %s198_s10 = sand.u32 1, %s1091_s17  }
  0x15   : > { %s76_s11 = ssub.s32 %s1099_s19, %s1378_s8  ;;  %s785_s12 = sshll.u32 %s198_s10, 6 }
  0x16   : > { %p77_p0 = scmp.eq.s32.totalorder %s76_s11, 0  ;;  %s817_s13 = sshll.u32 %s1099_s19, 6 }
  0x17   : > { %s1370_s2 = sld [smem:[#allocation15_spill]]  ;;  %s200_s27 = scalar_lea.vmem [#allocation7], %s785_s12 }
  0x18   : > { %s1229_s14 = scalar_select %p77_p0, %s1091_s17, %s79_s22  }
  0x19   : > { %s210_s28 = sshll.u32 %s200_s27, 4  ;;  %s180_s0 = sshll.u32 %s1352_s1, 4  ;;  %s211_s28 = int_to_ptr.vmem [resolvable:$true] %s210_s28  ;;  %s181_s0 = int_to_ptr.hbm [resolvable:$true] %s180_s0 }
  0x1a   : > { %s197_s10 = scalar_lea.sflag [#allocation4], %s196_s9  ;;  %s1106_s11 = smov 128  }
  0x1b   : > { %s1107_s8 = smov 8   ;;  %s1108_s22 = smov [#allocation5]  }
  0x1c   : > { %s182_s15 = sshll.u32 %s1108_s22, 4  ;;  %s224_s19 = scalar_lea.vmem [#allocation8], %s785_s12  ;;  %s183_s15 = int_to_ptr.vmem [resolvable:$true] %s182_s15 }
  0x1d   : > { %s207_s26 = scalar_lea.hbm %s1370_s2, %s817_s13  ;;  %s234_s21 = sshll.u32 %s224_s19, 4  ;;  %s235_s21 = int_to_ptr.vmem [resolvable:$true] %s234_s21 }
  0x1e   : > { %s208_s30 = sshll.u32 %s207_s26, 4  ;;  %s231_s26 = scalar_lea.hbm %s1354_s3, %s817_s13  ;;  %s209_s30 = int_to_ptr.hbm [resolvable:$true] %s208_s30 }
  0x1f   : > { %844 = dma.hbm_to_vmem [thread:$0]  (!%p1212_p12), %s209_s30, 1024, %s211_s28, %s197_s10, %s1106_s11, %s1106_s11, %s1107_s8  }
  0x20   : > { %840 = dma.hbm_to_vmem [thread:$0]  (!%p1206_p11), %s181_s0, 5120, %s183_s15, [#allocation6], %s1106_s11, %s1106_s11, %s1107_s8  }
  0x21   : > { %s232_s27 = sshll.u32 %s231_s26, 4  ;;  %246 = sbr.rel (%p1197_p8) target bundleno = 1094 (0x446), region = 36  ;;  %s233_s27 = int_to_ptr.hbm [resolvable:$true] %s232_s27 }
  0x22   : > { %847 = dma.hbm_to_vmem [thread:$0]  (!%p1212_p12), %s233_s27, 1024, %s235_s21, %s197_s10, %s1106_s11, %s1106_s11, %s1107_s8  }
  0x26   : > { %1070 = dma.done.wait (%p1178_p3), [#allocation4], 128  }
  0x27   : > { %1072 = vsyncadd (%p1178_p3), [#allocation4], 4294967168 }
  0x28   : > { %1074 = dma.done.wait (%p1178_p3), [#allocation6], 5120  }
  0x29   : > { %1076 = vsyncadd (%p1178_p3), [#allocation6], 4294962176  ;;  %s1371_s0 = sadd.s32 4294967295, %s1103_s20   ;;  %s260_s19 = sand.u32 1, %s1087_s16  }
  0x2a   : > { %s258_s2 = sand.u32 1, %s1371_s0   ;;  %s796_s29 = sshll.u32 %s260_s19, 6 }
  0x2b   : > { %s259_s6 = scalar_lea.sflag [#allocation4], %s258_s2  ;;  %s1259_s7 = scalar_lea.vmem [#allocation7], %s796_s29 }
  0x2c   : > { %1078 = dma.done.wait (%p1189_p6), %s259_s6, 2048  }
  0x2d   : > { %1080 = vsyncadd (%p1189_p6), %s259_s6, 4294965248  ;;  %s1265_s8 = scalar_lea.vmem [#allocation8], %s796_s29  ;;  %s1109_s23 = smov 16   ;;  %v799_v6 = vld [vmem:[%s1259_s7 + $0x18] sm:$0xff]  ;;  %v801_v7 = vld [vmem:[%s1259_s7 + $0x28] sm:$0xff]  ;;  %vm401_vm0 = vcmask 130048  }
  0x2e   : > { %v805_v0 = vld [vmem:[%s1265_s8 + $0x18] sm:$0xff]  ;;  %v804_v1 = vld [vmem:[%s1265_s8 + $0x10] sm:$0xff]  ;;  %v806_v2 = vld [vmem:[%s1265_s8 + $0x20] sm:$0xff]  ;;  %s1110_s25 = smov 32   ;;  %s1111_s9 = smov 48   ;;  %vm404_vm1 = vcmask 261120  }
  0x2f   : > { %414 = vrot.lane.b32.xlu0 %v805_v0, %s1109_s23  ;;  %412 = vrot.lane.b32.xlu1 %v804_v1, %s1109_s23  ;;  %v807_v3 = vld [vmem:[%s1265_s8 + $0x28] sm:$0xff]  ;;  %v809_v4 = vld [vmem:[%s1265_s8 + $0x38] sm:$0xff]  ;;  %vm407_vm2 = vcmask 392192   ;;  %s1112_s12 = smov 64   ;;  %vm462_vm3 = vcmask 523264   ;;  %v329_v50 = vld [vmem:[#allocation5 + $0x70] sm:$0xff] }
  0x30   : > { %420 = vrot.lane.b32.xlu2 %v806_v2, %s1110_s25  ;;  %v808_v5 = vld [vmem:[%s1265_s8 + $0x30] sm:$0xff]  ;;  %v803_v9 = vld [vmem:[%s1259_s7 + $0x38] sm:$0xff]  ;;  %v800_v10 = vld [vmem:[%s1259_s7 + $0x20] sm:$0xff]  ;;  %s1113_s13 = smov 104   ;;  %s1114_s28 = smov 96   ;;  %vm312_vm4 = vcmask 193536  }
  0x31   : > { %v798_v8 = vld [vmem:[%s1259_s7 + $0x10] sm:$0xff]  ;;  %v366_v13 = vld [vmem:[%s1265_s8] sm:$0xff]  ;;  %v367_v17 = vld [vmem:[%s1265_s8 + $0x8] sm:$0xff]  ;;  %s1115_s30 = smov 80   ;;  %p305_p1 = scmp.lt.s32.totalorder %s1095_s18, 1  ;;  %vm669_vm9 = vcmask 0  }
  0x32   : > { %v802_v11 = vld [vmem:[%s1259_s7 + $0x30] sm:$0xff]  ;;  %v356_v31 = vld [vmem:[%s1259_s7 + $0x8] sm:$0xff]  ;;  %v355_v37 = vld [vmem:[%s1259_s7] sm:$0xff] }
  0x33   : > { %v330_v49 = vld [vmem:[#allocation5 + $0x78] sm:$0xff]  ;;  %v328_v53 = vld [vmem:[#allocation5 + $0x68] sm:$0xff]  ;;  %v345_v54 = vld [vmem:[#allocation5 + $0xf0] sm:$0xff]  ;;  %s1380_s18 = smov (!%p305_p1, %s1095_s18), 1 }
  0x34   : > { %533 = vmatpush.msra.mxu3 %v330_v49  ;;  %v346_v51 = vld [vmem:[#allocation5 + $0xf8] sm:$0xff]  ;;  %v344_v55 = vld [vmem:[#allocation5 + $0xe8] sm:$0xff]  ;;  %v327_v58 = vld [vmem:[#allocation5 + $0x60] sm:$0xff]  ;;  %s307_s11 = scalar_lea.vmem %s1355_s4, %s1380_s18 }
  0x35   : > { %553 = vmatpush.msra.mxu0 %v346_v51  ;;  %v314_v57 = vld [vmem:[#allocation3] sm:$0x3f]  ;;  %v343_v59 = vld [vmem:[#allocation5 + $0xe0] sm:$0xff]  ;;  %v325_v62 = vld [vmem:[#allocation5 + $0x50] sm:$0xff] }
  0x36   : > { %534 = vmatpush.msra.mxu3 %v329_v50  ;;  %v326_v60 = vld [vmem:[#allocation5 + $0x58] sm:$0xff]  ;;  %v341_v63 = vld [vmem:[#allocation5 + $0xd0] sm:$0xff]  ;;  %v324_v0 = vld [vmem:[#allocation5 + $0x48] sm:$0xff] }
  0x37   : > { %422 = vrot.lane.b32.xlu0 %v807_v3, %s1110_s25  ;;  %430 = vrot.lane.b32.xlu1 %v809_v4, %s1111_s9  ;;  %v342_v61 = vld [vmem:[#allocation5 + $0xd8] sm:$0xff]  ;;  %v340_v1 = vld [vmem:[#allocation5 + $0xc8] sm:$0xff]  ;;  %v323_v2 = vld [vmem:[#allocation5 + $0x40] sm:$0xff] }
  0x38   : > { %428 = vrot.lane.b32.xlu2 %v808_v5, %s1111_s9  ;;  %554 = vmatpush.msra.mxu0 %v345_v54  ;;  %v339_v3 = vld [vmem:[#allocation5 + $0xc0] sm:$0xff]  ;;  %v322_v4 = vld [vmem:[#allocation5 + $0x38] sm:$0xff] }
  0x39   : > { %535 = vmatpush.msra.mxu3 %v328_v53  ;;  %v338_v5 = vld [vmem:[#allocation5 + $0xb8] sm:$0xff] }
  0x3a   : > { %555 = vmatpush.msra.mxu0 %v344_v55  ;;  %v1116_v55 = vmov 0.0  }
  0x3b   : > { %536 = vmatpush.msra.mxu3 %v327_v58  ;;  %313 = vst.msk [vmem:[#allocation2] sm:$0x3f] %vm312_vm4, %v1116_v55 }
  0x3c   : > { %556 = vmatpush.msra.mxu0 %v343_v59 }
  0x3d   : > { %537 = vmatpush.msra.mxu3 %v326_v60 }
  0x3e   : > { %557 = vmatpush.msra.mxu0 %v342_v61 }
  0x3f   : > { %381 = vrot.lane.b32.xlu0 %v799_v6, %s1109_s23  ;;  %389 = vrot.lane.b32.xlu1 %v801_v7, %s1110_s25  ;;  %v321_v6 = vld [vmem:[#allocation5 + $0x30] sm:$0xff] }
  0x40   : > { %379 = vrot.lane.b32.xlu2 %v798_v8, %s1109_s23  ;;  %538 = vmatpush.msra.mxu3 %v325_v62  ;;  %v337_v7 = vld [vmem:[#allocation5 + $0xb0] sm:$0xff]  ;;  %v320_v8 = vld [vmem:[#allocation5 + $0x28] sm:$0xff] }
  0x41   : > { %558 = vmatpush.msra.mxu0 %v341_v63 }
  0x42   : > { %539 = vmatpush.msra.mxu3 %v324_v0 }
  0x43   : > { %559 = vmatpush.msra.mxu0 %v340_v1 }
  0x44   : > { %540 = vmatpush.msra.mxu3 %v323_v2 }
  0x45   : > { %560 = vmatpush.msra.mxu0 %v339_v3 }
  0x46   : > { %541 = vmatpush.msra.mxu3 %v322_v4 }
  0x47   : > { %397 = vrot.lane.b32.xlu0 %v803_v9, %s1111_s9  ;;  %387 = vrot.lane.b32.xlu1 %v800_v10, %s1110_s25  ;;  %v336_v9 = vld [vmem:[#allocation5 + $0xa8] sm:$0xff]  ;;  %v319_v10 = vld [vmem:[#allocation5 + $0x20] sm:$0xff] }
  0x48   : > { %561 = vmatpush.msra.mxu0 %v338_v5  ;;  %542 = vmatpush.msra.mxu3 %v321_v6 }
  0x4a   : > { %562 = vmatpush.msra.mxu0 %v337_v7  ;;  %543 = vmatpush.msra.mxu3 %v320_v8 }
  0x4c   : > { %563 = vmatpush.msra.mxu0 %v336_v9  ;;  %544 = vmatpush.msra.mxu3 %v319_v10 }
  0x4f   : > { %395 = vrot.lane.b32.xlu0 %v802_v11, %s1111_s9  ;;  %v335_v11 = vld [vmem:[#allocation5 + $0xa0] sm:$0xff] }
  0x50   : > { %564 = vmatpush.msra.mxu0 %v335_v11  ;;  %v650_v11 = vld [vmem:[#allocation2] sm:$0x3f] }
  0x8a   : > { %v421_v12 = vpop.permute.xlu2 %420 }
  0x92   : > { %v429_v18 = vpop.permute.xlu2 %428 }
  0x9a   : > { %v380_v36 = vpop.permute.xlu2 %379 }
  0x9b   : > { %v402_v40 = vsel %vm401_vm0, %v355_v37, %v380_v36 }
  0xa1   : > { %v415_v14 = vpop.permute.xlu0 %414  ;;  %v413_v15 = vpop.permute.xlu1 %412 }
  0xa2   : > { %v434_v16 = vsel %vm401_vm0, %v366_v13, %v413_v15  ;;  %v435_v20 = vsel %vm401_vm0, %v367_v17, %v415_v14  ;;  %v317_v13 = vld [vmem:[#allocation5 + $0x10] sm:$0xff] }
  0xa3   : > { %v436_v19 = vsel %vm404_vm1, %v434_v16, %v421_v12  ;;  %v318_v12 = vld [vmem:[#allocation5 + $0x18] sm:$0xff] }
  0xa4   : > { %v438_v21 = vsel %vm407_vm2, %v436_v19, %v429_v18  ;;  %545 = vmatpush.msra.mxu3 %v318_v12  ;;  %v316_v18 = vld [vmem:[#allocation5 + $0x8] sm:$0xff] }
  0xa5   : > { %v442_v26 = vmul.f32 %v438_v21, %v438_v21 }
  0xa6   : > { %546 = vmatpush.msra.mxu3 %v317_v13 }
  0xa8   : > { %547 = vmatpush.msra.mxu3 %v316_v18 }
  0xa9   : > { %v423_v22 = vpop.permute.xlu0 %422  ;;  %v431_v23 = vpop.permute.xlu1 %430 }
  0xaa   : > { %v437_v24 = vsel %vm404_vm1, %v435_v20, %v423_v22  ;;  %v354_v22 = vld [vmem:[#allocation5 + $0x138] sm:$0xff] }
  0xab   : > { %v439_v25 = vsel %vm407_vm2, %v437_v24, %v431_v23  ;;  %v353_v23 = vld [vmem:[#allocation5 + $0x130] sm:$0xff]  ;;  %v352_v24 = vld [vmem:[#allocation5 + $0x128] sm:$0xff] }
  0xac   : > { %v443_v27 = vmul.f32 %v439_v25, %v439_v25  ;;  %v913_v28 = vpack.i.bf16 %v438_v21, %v439_v25 }
  0xae   : > { %914 = vrot.lane.b32.xlu2 %v913_v28, %s1112_s12  ;;  %v918_v29 = vpack.i.bf16 %v442_v26, %v443_v27  ;;  %v334_v26 = vld [vmem:[#allocation5 + $0x98] sm:$0xff]  ;;  %v351_v27 = vld [vmem:[#allocation5 + $0x120] sm:$0xff]  ;;  %v333_v28 = vld [vmem:[#allocation5 + $0x90] sm:$0xff] }
  0xaf   : > { %565 = vmatpush.msra.mxu0 %v334_v26 }
  0xb0   : > { %919 = vrot.lane.b32.xlu1 %v918_v29, %s1112_s12  ;;  %v350_v29 = vld [vmem:[#allocation5 + $0x118] sm:$0xff] }
  0xb1   : > { %v382_v30 = vpop.permute.xlu0 %381  ;;  %v390_v32 = vpop.permute.xlu1 %389  ;;  %566 = vmatpush.msra.mxu0 %v333_v28 }
  0xb2   : > { %v403_v33 = vsel %vm401_vm0, %v356_v31, %v382_v30  ;;  %v332_v30 = vld [vmem:[#allocation5 + $0x88] sm:$0xff]  ;;  %v349_v31 = vld [vmem:[#allocation5 + $0x110] sm:$0xff] }
  0xb3   : > { %v406_v34 = vsel %vm404_vm1, %v403_v33, %v390_v32  ;;  %567 = vmatpush.msra.mxu0 %v332_v30  ;;  %v331_v32 = vld [vmem:[#allocation5 + $0x80] sm:$0xff]  ;;  %v348_v33 = vld [vmem:[#allocation5 + $0x108] sm:$0xff] }
  0xb5   : > { %568 = vmatpush.msra.mxu0 %v331_v32 }
  0xb9   : > { %v398_v35 = vpop.permute.xlu0 %397  ;;  %v388_v41 = vpop.permute.xlu1 %387 }
  0xba   : > { %v1300_v38 = vsel %vm407_vm2, %v406_v34, %v398_v35  ;;  %v405_v42 = vsel %vm404_vm1, %v402_v40, %v388_v41  ;;  %v347_v34 = vld [vmem:[#allocation5 + $0x100] sm:$0xff] }
  0xbb   : > { %v445_v39 = vmul.f32 %v439_v25, %v1300_v38  ;;  %v441_v15 = vmul.f32 %v1300_v38, %v1300_v38  ;;  %v315_v25 = vld [vmem:[#allocation5] sm:$0xff] }
  0xbc   : > { %548 = vmatpush.msra.mxu3 %v315_v25 }
  0xc1   : > { %v396_v43 = vpop.permute.xlu0 %395 }
  0xc2   : > { %v1306_v44 = vsel %vm407_vm2, %v405_v42, %v396_v43 }
  0xc3   : > { %v444_v45 = vmul.f32 %v438_v21, %v1306_v44  ;;  %v440_v19 = vmul.f32 %v1306_v44, %v1306_v44 }
 0x108   : > { %v915_v46 = vpop.permute.xlu2 %914 }
 0x109   : > { %v917_v47 = vunpack.i.h.bf16 %v915_v46  ;;  %v916_v48 = vunpack.i.l.bf16 %v915_v46 }
 0x10b   : > { %v464_v52 = vsel %vm462_vm3, %v1300_v38, %v916_v48  ;;  %v463_v56 = vsel %vm462_vm3, %v1306_v44, %v917_v47 }
 0x10c   : > { %484 = vmatpush.msra.mxu2 %v464_v52 }
 0x10e   : > { %485 = vmatpush.msra.mxu2 %v463_v56 }
 0x10f   : > { %810 = vmatmul.msk.f32.vlgmr.msra.gmra.mxu2 %vm401_vm0, %v314_v57 }
 0x110   : > { %524 = vmatpush.msrb.mxu2 %v445_v39 }
 0x112   : > { %525 = vmatpush.msrb.mxu2 %v444_v45 }
 0x117   : > { %812 = vmatmul.msk.f32.vlgmr.msrb.gmra.mxu2 %vm401_vm0, %v314_v57 }
 0x122   : > { %v920_v14 = vpop.permute.xlu1 %919 }
 0x123   : > { %v922_v16 = vunpack.i.h.bf16 %v920_v14  ;;  %v921_v17 = vunpack.i.l.bf16 %v920_v14 }
 0x125   : > { %v466_v20 = vsel %vm462_vm3, %v441_v15, %v921_v17  ;;  %v465_v21 = vsel %vm462_vm3, %v440_v19, %v922_v16 }
 0x126   : > { %504 = vmatpush.msra.mxu1 %v466_v20 }
 0x128   : > { %505 = vmatpush.msra.mxu1 %v465_v21 }
 0x129   : > { %811 = vmatmul.msk.f32.vlgmr.msra.gmra.mxu1 %vm401_vm0, %v314_v57 }
 0x12a   : > { %581 = vmatpush.msrb.mxu1 %v354_v22 }
 0x12c   : > { %582 = vmatpush.msrb.mxu1 %v353_v23 }
 0x12e   : > { %583 = vmatpush.msrb.mxu1 %v352_v24 }
 0x130   : > { %584 = vmatpush.msrb.mxu1 %v351_v27 }
 0x132   : > { %585 = vmatpush.msrb.mxu1 %v350_v29 }
 0x134   : > { %586 = vmatpush.msrb.mxu1 %v349_v31 }
 0x136   : > { %587 = vmatpush.msrb.mxu1 %v348_v33 }
 0x138   : > { %588 = vmatpush.msrb.mxu1 %v347_v34 }
 0x192   : > { %v487_v35 = vpop.f32.mrf.mxu2 }
 0x193   : > { %549 = vmatmul.f32.vlgmr.msra.gmra.mxu3 %v487_v35 }
 0x19a   : > { %v527_v36 = vpop.f32.mrf.mxu2 }
 0x19b   : > { %813 = vmatmul.msk.f32.vlgmr.msrb.gmra.mxu1 %vm462_vm3, %v527_v36 }
 0x1a6   : > { %v507_v37 = vpop.f32.mrf.mxu1 }
 0x1a7   : > { %569 = vmatmul.f32.vlgmr.msra.gmra.mxu0 %v507_v37 }
 0x216   : > { %v550_v38 = vpop.f32.mrf.mxu3 }
 0x218   : > { %v590_v40 = vpop.f32.mrf.mxu1 }
 0x224   : > { %v570_v39 = vpop.f32.mrf.mxu0 }
 0x225   : > { %v571_v41 = vadd.f32 %v570_v39, %v550_v38 }
 0x227   : > { %v591_v42 = vadd.f32 %v590_v40, %v571_v41 }
 0x229   : > { %595 = vrot.lane.b32.xlu0 %v591_v42, %s1113_s13  ;;  %v593_v43 = vmul.f32 %v591_v42, %v591_v42 }
 0x22b   : > { %600 = vrot.lane.b32.xlu2 %v593_v43, %s1111_s9 }
 0x231   : > { %618 = vrot.lane.b32.xlu0 %v593_v43, %s1113_s13 }
 0x285   : > { %v601_v44 = vpop.permute.xlu2 %600 }
 0x286   : > { %v603_v45 = vsub.f32 %v591_v42, %v601_v44 }
 0x288   : > { %624 = vrot.lane.b32.xlu1 %v603_v45, %s1113_s13 }
 0x29b   : > { %v596_v46 = vpop.permute.xlu0 %595 }
 0x29c   : > { %v598_v47 = vmul.f32 %v596_v46, %v591_v42 }
 0x29e   : > { %605 = vrot.lane.b32.xlu2 %v598_v47, %s1114_s28  ;;  %v609_v63 = vmul.f32 2.0, %v598_v47 }
 0x2a0   : > { %v610_v5 = vadd.f32 0.0001, %v609_v63 }
 0x2a3   : > { %v619_v56 = vpop.permute.xlu0 %618 }
 0x2a4   : > { %v621_v57 = vadd.f32 %v619_v56, %v593_v43 }
 0x2a6   : > { %v622_v58 = vadd.f32 0.0001, %v621_v57 }
 0x2f8   : > { %v606_v48 = vpop.permute.xlu2 %605 }
 0x2f9   : > { %v608_v49 = vsub.f32 %v591_v42, %v606_v48 }
 0x2fa   : > { %v625_v50 = vpop.permute.xlu1 %624 }
 0x2fb   : > { %v611_v51 = vmul.f32 2.0, %v608_v49  ;;  %v627_v52 = vadd.f32 %v625_v50, %v603_v45 }
 0x2fd   : > { %v612_v53 = vadd.f32 0.0009, %v611_v51  ;;  %v628_v54 = vadd.f32 0.0009, %v627_v52 }
 0x2ff   : > { %630 = vrot.lane.b32.xlu1 %v628_v54, %s1115_s30  ;;  %614 = vrot.lane.b32.xlu2 %v612_v53, %s1110_s25 }
 0x359   : > { %v615_v4 = vpop.permute.xlu2 %614 }
 0x35a   : > { %v617_v8 = vmul.f32 %v615_v4, %v610_v5 }
 0x371   : > { %v631_v59 = vpop.permute.xlu1 %630 }
 0x372   : > { %v633_v60 = vmul.f32 %v631_v59, %v622_v58 }
 0x374   : > { %923 = vrcp.f32 %v633_v60  ;;  %v645_v1 = vand.u32 2147483648, %v633_v60  ;;  %v643_v3 = vand.u32 2147483647, %v633_v60  ;;  %vm639_vm6 = vweird.f32 %v633_v60 }
 0x376   : > { %v646_v7 = vor.u32 1.1754944e-38, %v645_v1  ;;  %vm644_vm8 = vcmp.eq.f32.partialorder %v643_v3, 8.507059e+37 }
 0x37a   : > { %v924_v61 = vpop.eup %923 }
 0x37b   : > { %v635_v62 = vmul.f32 %v924_v61, %v633_v60  ;;  %vm640_vm5 = vweird.f32 %v924_v61 }
 0x37c   : > { %vm641_vm7 = vmor %vm639_vm6, %vm640_vm5 }
 0x37d   : > { %v636_v0 = vsub.f32 1.0, %v635_v62 }
 0x37f   : > { %v637_v2 = vmul.f32 %v924_v61, %v636_v0 }
 0x381   : > { %v638_v6 = vadd.f32 %v924_v61, %v637_v2 }
 0x383   : > { %v642_v9 = vsel %vm641_vm7, %v924_v61, %v638_v6 }
 0x384   : > { %v647_v10 = vsel %vm644_vm8, %v646_v7, %v642_v9 }
 0x385   : > { %v648_v12 = vmul.f32 %v647_v10, %v617_v8 }
 0x387   : > { %v651_v13 = vadd.f32 %v650_v11, %v648_v12 }
 0x389   : > { %653 = vst.msk [vmem:[#allocation2] sm:$0x3f] %vm312_vm4, %v651_v13 }
 0x390   : > { %v657_v14 = vld [vmem:[#allocation2] sm:$0x3f] }
 0x391   : > { %v658_v15 = vsel %vm312_vm4, %v657_v14, 0.0 }
 0x392   : > { %659 = vadd.xlane.f32.xlu0 %v658_v15 }
 0x405   : > { %v660_v16 = vpop.xlane.xlu0 %659 }
 0x406   : > { %v661_v17 = vrot.slane %v660_v16, 4 }
 0x408   : > { %v662_v18 = vadd.f32 %v661_v17, %v660_v16 }
 0x40a   : > { %v663_v19 = vrot.slane %v662_v18, 2 }
 0x40c   : > { %v664_v20 = vadd.f32 %v663_v19, %v662_v18 }
 0x40e   : > { %v665_v21 = vrot.slane %v664_v20, 1 }
 0x410   : > { %v666_v22 = vadd.f32 %v665_v21, %v664_v20 }
 0x412   : > { %820 = vpush %v666_v22 }
 0x443   : > { %s821_s22 = spop %820 }
 0x444   : > { %v668_v23 = vstv %s821_s22 }
 0x445   : > { %670 = vst.msk [vmem:[%s307_s11] sm:$0x1] %vm669_vm9, %v668_v23 }
 0x446 PF: > { %s16_s20 = sadd.s32 1, %s1103_s20   ;;  %s1372_s18 = sld [smem:[#allocation12_spill]] }
 0x447   : > { %p13_p2 = scmp.ge.s32.totalorder %s16_s20, 4   ;;  %s1373_s19 = sld [smem:[#allocation13_spill]] }
 0x448   : > { %s1374_s15 = smov %s1087_s16  ;;  %s1375_s16 = smov %s1091_s17 }
 0x449   : > { %s1376_s17 = smov %s1229_s14  ;;  %15 = sbr.rel (!%p13_p2) target bundleno = 7 (0x7), region = 108 }
 0x44e   :  { %688 = vsyncpa [#allocation4], 1 }
 0x44f   :  { %690 = vsyncpa [#allocation4 + $0x1], 1 }
 0x450   :  { %691 = vsyncpa [#allocation6], 1 }

</bundles_post_ra>
